<compile_context>
chip_gen: v6e
topology: v6e:2x2x1
jax: 0.10.0
libtpu: 0.0.40
codegen_flags: <defaults>
</compile_context>

<pallas_src>
import functools

import jax
import jax.numpy as jnp
from jax.experimental import pallas as pl
from jax.experimental.pallas import tpu as pltpu


def _round_up(x: int, m: int) -> int:
    return ((x + m - 1) // m) * m


def _make_kernel(n_layers: int, action_dim: int):
    """Kernel for n_layers = n_hidden + 1 (folded dueling head is last)."""

    def kernel(x_ref, w_ref, b_ref, q_ref):
        h = x_ref[...]                                   # (tile_b, W) padded state
        # Hidden fc layers with ReLU. Padded columns stay exactly zero.
        for l in range(n_layers - 1):
            h = jnp.dot(h, w_ref[l], preferred_element_type=jnp.float32) + b_ref[l]
            h = jnp.maximum(h, 0.0)
            # TODO(synk): the reference module's dropout>0 branch constructs
            # nn.Linear(p=...), which is a bug; eval-mode dropout is identity
            # anyway, so nothing to emulate here.
        # Folded dueling head: a single matmul already yields
        # Q = V + A - mean(A, axis=-1, keepdims=True).
        out = (jnp.dot(h, w_ref[n_layers - 1], preferred_element_type=jnp.float32)
               + b_ref[n_layers - 1])
        q_ref[...] = out[:, :action_dim].astype(q_ref.dtype)

    return kernel


def init_params(key, state_dim, action_dim, fc_dims):
    """PyTorch-style uniform(+-1/sqrt(fan_in)) init; weights are (in, out)."""
    params = []
    dims = [state_dim] + list(fc_dims)
    for i in range(len(fc_dims)):
        fan_in, fan_out = dims[i], dims[i + 1]
        key, kw, kb = jax.random.split(key, 3)
        bound = 1.0 / jnp.sqrt(jnp.float32(fan_in))
        w = jax.random.uniform(kw, (fan_in, fan_out), jnp.float32, -bound, bound)
        b = jax.random.uniform(kb, (1, fan_out), jnp.float32, -bound, bound)
        params += [w, b]
    fan_in = dims[-1]
    bound = 1.0 / jnp.sqrt(jnp.float32(fan_in))
    key, kw, kb = jax.random.split(key, 3)
    wV = jax.random.uniform(kw, (fan_in, 1), jnp.float32, -bound, bound)
    bV = jax.random.uniform(kb, (1, 1), jnp.float32, -bound, bound)
    key, kw, kb = jax.random.split(key, 3)
    wA = jax.random.uniform(kw, (fan_in, action_dim), jnp.float32, -bound, bound)
    bA = jax.random.uniform(kb, (1, action_dim), jnp.float32, -bound, bound)
    params += [wV, bV, wA, bA]
    return params


@functools.partial(jax.jit, static_argnames=("n_fc", "action_dim"))
def dueling_dqn_forward(state, params, *, n_fc, action_dim):
    batch, state_dim = state.shape
    n_layers = n_fc + 1

    # ---- parameter prep (traced XLA ops; fused, negligible cost) ----------
    ws, bs = [], []
    idx = 0
    for _ in range(n_fc):
        ws.append(params[idx])
        bs.append(params[idx + 1])
        idx += 2
    wV, bV, wA, bA = params[idx], params[idx + 1], params[idx + 2], params[idx + 3]
    # Fold the dueling combination into the final linear layer (exact forward).
    w_q = wV + wA - jnp.mean(wA, axis=1, keepdims=True)
    b_q = bV + bA - jnp.mean(bA, axis=1, keepdims=True)
    ws.append(w_q)
    bs.append(b_q)

    # Lane-dense packing: every layer zero-padded to (W, W) / (1, W), W % 128 == 0.
    width = _round_up(max([state_dim, action_dim] + [w.shape[1] for w in ws]), 128)
    w_pack = jnp.stack(
        [jnp.pad(w, ((0, width - w.shape[0]), (0, width - w.shape[1]))) for w in ws])
    b_pack = jnp.stack(
        [jnp.pad(b, ((0, 0), (0, width - b.shape[1]))) for b in bs])

    # Batch tiling: grid over batch rows; weights resident across grid steps.
    tile_b = 128 if batch >= 128 else _round_up(batch, 8)
    padded_batch = _round_up(batch, tile_b)
    x_pad = jnp.pad(state.astype(jnp.float32),
                    ((0, padded_batch - batch), (0, width - state_dim)))

    kernel = _make_kernel(n_layers, action_dim)
    q = pl.pallas_call(
        kernel,
        out_shape=jax.ShapeDtypeStruct((padded_batch, action_dim), jnp.float32),
        grid=(padded_batch // tile_b,),
        in_specs=[
            pl.BlockSpec((tile_b, width), lambda i: (i, 0)),
            pl.BlockSpec((n_layers, width, width), lambda i: (0, 0, 0)),
            pl.BlockSpec((n_layers, 1, width), lambda i: (0, 0, 0)),
        ],
        out_specs=pl.BlockSpec((tile_b, action_dim), lambda i: (i, 0)),
        compiler_params=pltpu.CompilerParams(
            dimension_semantics=("parallel",)),
        cost_estimate=pl.CostEstimate(
            flops=2 * padded_batch * width * width * n_layers,
            transcendentals=0,
            bytes_accessed=4 * (padded_batch * width
                                + n_layers * width * width
                                + n_layers * width
                                + padded_batch * action_dim)),
    )(x_pad, w_pack, b_pack)

    return q[:batch] if padded_batch != batch else q


def reference_forward(state, params, n_fc):
    """Pure-JAX reference with the original dueling parameterization."""
    h = state
    idx = 0
    for _ in range(n_fc):
        h = jnp.maximum(h @ params[idx] + params[idx + 1], 0.0)
        idx += 2
    V = h @ params[idx] + params[idx + 1]
    A = h @ params[idx + 2] + params[idx + 3]
    return V + A - jnp.mean(A, axis=-1, keepdims=True)


if __name__ == "__main__":
    # Small, module-consistent shapes: MLP over flat state vectors.
    batch = 8
    state_dim = 16
    fc_dims = (32, 32)
    action_dim = 4

    key = jax.random.PRNGKey(0)
    key, kx = jax.random.split(key)
    state = jax.random.normal(kx, (batch, state_dim), jnp.float32)
    params = init_params(key, state_dim, action_dim, fc_dims)

    q = dueling_dqn_forward(state, params, n_fc=len(fc_dims), action_dim=action_dim)
    q = jax.block_until_ready(q)

    q_ref = reference_forward(state, params, len(fc_dims))
    assert q.shape == (batch, action_dim)
    assert jnp.allclose(q, q_ref, atol=1e-4, rtol=1e-4), "mismatch vs reference"

    print("KERNEL_OK")
</pallas_src>

<mosaic_0001>
module attributes {stable_mosaic.version = 11 : i64} {
  func.func @kernel(%arg0: i32, %arg1: memref<8x128xf32, #tpu.memory_space<vmem>>, %arg2: memref<3x128x128xf32, #tpu.memory_space<vmem>>, %arg3: memref<3x1x128xf32, #tpu.memory_space<vmem>>, %arg4: memref<8x4xf32, #tpu.memory_space<vmem>>) attributes {dimension_semantics = [#tpu.dimension_semantics<parallel>], iteration_bounds = array<i64: 1>, scalar_prefetch = 0 : i64, scratch_operands = 0 : i64, tpu.core_type = #tpu.core_type<tc>, window_params = [{transform_indices = @transform_0, window_bounds = array<i64: 8, 128>}, {pipeline_mode = #tpu.pipeline_mode<synchronous>, transform_indices = @transform_1, window_bounds = array<i64: 3, 128, 128>}, {pipeline_mode = #tpu.pipeline_mode<synchronous>, transform_indices = @transform_2, window_bounds = array<i64: 3, 1, 128>}, {transform_indices = @transform_3, window_bounds = array<i64: 8, 4>}]} {
    %c0 = arith.constant 0 : index
    %c0_0 = arith.constant 0 : index
    %0 = vector.load %arg1[%c0, %c0_0] : memref<8x128xf32, #tpu.memory_space<vmem>>, vector<8x128xf32>
    %c0_1 = arith.constant 0 : index
    %c0_2 = arith.constant 0 : index
    %c0_3 = arith.constant 0 : index
    %1 = vector.load %arg2[%c0_1, %c0_2, %c0_3] : memref<3x128x128xf32, #tpu.memory_space<vmem>>, vector<1x128x128xf32>
    %2 = vector.shape_cast %1 : vector<1x128x128xf32> to vector<128x128xf32>
    %cst = arith.constant dense<0.000000e+00> : vector<8x128xf32>
    %3 = tpu.matmul %0, %2, %cst {dimension_numbers = #tpu.dot_dimension_numbers<[1], [0], [0], [1], [0, 0, 1, 1], [], []>} : vector<8x128xf32>, vector<128x128xf32>, vector<8x128xf32> -> vector<8x128xf32>
    %c0_4 = arith.constant 0 : index
    %c0_5 = arith.constant 0 : index
    %c0_6 = arith.constant 0 : index
    %4 = vector.load %arg3[%c0_4, %c0_5, %c0_6] : memref<3x1x128xf32, #tpu.memory_space<vmem>>, vector<1x1x128xf32>
    %5 = vector.shape_cast %4 : vector<1x1x128xf32> to vector<1x128xf32>
    %6 = vector.broadcast %5 : vector<1x128xf32> to vector<8x128xf32>
    %7 = arith.addf %3, %6 : vector<8x128xf32>
    %cst_7 = arith.constant 0.000000e+00 : f32
    %8 = vector.broadcast %cst_7 : f32 to vector<8x128xf32>
    %9 = arith.maximumf %7, %8 : vector<8x128xf32>
    %c1 = arith.constant 1 : index
    %c0_8 = arith.constant 0 : index
    %c0_9 = arith.constant 0 : index
    %10 = vector.load %arg2[%c1, %c0_8, %c0_9] : memref<3x128x128xf32, #tpu.memory_space<vmem>>, vector<1x128x128xf32>
    %11 = vector.shape_cast %10 : vector<1x128x128xf32> to vector<128x128xf32>
    %cst_10 = arith.constant dense<0.000000e+00> : vector<8x128xf32>
    %12 = tpu.matmul %9, %11, %cst_10 {dimension_numbers = #tpu.dot_dimension_numbers<[1], [0], [0], [1], [0, 0, 1, 1], [], []>} : vector<8x128xf32>, vector<128x128xf32>, vector<8x128xf32> -> vector<8x128xf32>
    %c1_11 = arith.constant 1 : index
    %c0_12 = arith.constant 0 : index
    %c0_13 = arith.constant 0 : index
    %13 = vector.load %arg3[%c1_11, %c0_12, %c0_13] : memref<3x1x128xf32, #tpu.memory_space<vmem>>, vector<1x1x128xf32>
    %14 = vector.shape_cast %13 : vector<1x1x128xf32> to vector<1x128xf32>
    %15 = vector.broadcast %14 : vector<1x128xf32> to vector<8x128xf32>
    %16 = arith.addf %12, %15 : vector<8x128xf32>
    %cst_14 = arith.constant 0.000000e+00 : f32
    %17 = vector.broadcast %cst_14 : f32 to vector<8x128xf32>
    %18 = arith.maximumf %16, %17 : vector<8x128xf32>
    %c2 = arith.constant 2 : index
    %c0_15 = arith.constant 0 : index
    %c0_16 = arith.constant 0 : index
    %19 = vector.load %arg2[%c2, %c0_15, %c0_16] : memref<3x128x128xf32, #tpu.memory_space<vmem>>, vector<1x128x128xf32>
    %20 = vector.shape_cast %19 : vector<1x128x128xf32> to vector<128x128xf32>
    %cst_17 = arith.constant dense<0.000000e+00> : vector<8x128xf32>
    %21 = tpu.matmul %18, %20, %cst_17 {dimension_numbers = #tpu.dot_dimension_numbers<[1], [0], [0], [1], [0, 0, 1, 1], [], []>} : vector<8x128xf32>, vector<128x128xf32>, vector<8x128xf32> -> vector<8x128xf32>
    %c2_18 = arith.constant 2 : index
    %c0_19 = arith.constant 0 : index
    %c0_20 = arith.constant 0 : index
    %22 = vector.load %arg3[%c2_18, %c0_19, %c0_20] : memref<3x1x128xf32, #tpu.memory_space<vmem>>, vector<1x1x128xf32>
    %23 = vector.shape_cast %22 : vector<1x1x128xf32> to vector<1x128xf32>
    %24 = vector.broadcast %23 : vector<1x128xf32> to vector<8x128xf32>
    %25 = arith.addf %21, %24 : vector<8x128xf32>
    %26 = vector.extract_strided_slice %25 {offsets = [0, 0], sizes = [8, 4], strides = [1, 1]} : vector<8x128xf32> to vector<8x4xf32>
    %c0_21 = arith.constant 0 : index
    %c0_22 = arith.constant 0 : index
    %27 = vector.load %arg4[%c0_21, %c0_22] : memref<8x4xf32, #tpu.memory_space<vmem>>, vector<8x4xf32>
    tpu.vector_store %arg4[%c0_21, %c0_22], %26 {strides = array<i32>} : memref<8x4xf32, #tpu.memory_space<vmem>>, vector<8x4xf32>,
    return
  }
  func.func @transform_0(%arg0: i32) -> (i32, i32) {
    %c0_i32 = arith.constant 0 : i32
    %c0_i32_0 = arith.constant 0 : i32
    return %arg0, %c0_i32 : i32, i32
  }
  func.func @transform_1(%arg0: i32) -> (i32, i32, i32) {
    %c0_i32 = arith.constant 0 : i32
    %c0_i32_0 = arith.constant 0 : i32
    %c0_i32_1 = arith.constant 0 : i32
    %c0_i32_2 = arith.constant 0 : i32
    return %c0_i32, %c0_i32_0, %c0_i32_1 : i32, i32, i32
  }
  func.func @transform_2(%arg0: i32) -> (i32, i32, i32) {
    %c0_i32 = arith.constant 0 : i32
    %c0_i32_0 = arith.constant 0 : i32
    %c0_i32_1 = arith.constant 0 : i32
    %c0_i32_2 = arith.constant 0 : i32
    return %c0_i32, %c0_i32_0, %c0_i32_1 : i32, i32, i32
  }
  func.func @transform_3(%arg0: i32) -> (i32, i32) {
    %c0_i32 = arith.constant 0 : i32
    %c0_i32_0 = arith.constant 0 : i32
    return %arg0, %c0_i32 : i32, i32
  }
}

</mosaic_0001>

<bundles_post_ra>
// kernel: dueling_dqn_forward.1
= control target key start
LH: loop header
LB: loop body
LE: loop exit
PB: predicated region body
PF: predicated region fallthrough
CT: control target
= control target key end

     0   :  { %v501_v0 = vmov 0.0   ;;  %vm502_vm0 = vmmov 0   ;;  %vm300_vm1 = vcmask 31744   ;;  %s736_s1 = inlined_call_operand.vmem [shape: f32[3,128,128], index: 1, kind: input, shape index: {}]   ;;  %s737_s0 = inlined_call_operand.vmem [shape: f32[8,128], index: 0, kind: input, shape index: {}]   ;;  %s738_s2 = inlined_call_operand.vmem [shape: f32[3,1,128], index: 2, kind: input, shape index: {}]   ;;  %s739_s3 = inlined_call_operand.vmem [shape: f32[8,4], index: 3, kind: output, shape index: {}]  }
   0x1   :  { %394 = vmatprep.subr.mxu0 %v501_v0  ;;  %v30_v1 = vld [vmem:[%s736_s1 + $0x78] sm:$0xff]  ;;  %v29_v2 = vld [vmem:[%s736_s1 + $0x70] sm:$0xff]  ;;  %426 = vmatprep.mubr.msk.f32.mxu0 %vm502_vm0, %v501_v0  ;;  %v28_v3 = vld [vmem:[%s736_s1 + $0x68] sm:$0xff] }
   0x2   :  { %395 = vmatpush3.msra.mxu0 %v30_v1  ;;  %429 = vmatprep.subr.mxu1 %v501_v0  ;;  %v27_v4 = vld [vmem:[%s736_s1 + $0x60] sm:$0xff]  ;;  %v322_v5 = vld [vmem:[%s736_s1 + $0xf8] sm:$0xff]  ;;  %v321_v7 = vld [vmem:[%s736_s1 + $0xf0] sm:$0xff] }
   0x3   :  { %396 = vmatprep.subr.mxu0 %v501_v0  ;;  %461 = vmatprep.mubr.msk.f32.mxu1 %vm502_vm0, %v501_v0  ;;  %v26_v6 = vld [vmem:[%s736_s1 + $0x58] sm:$0xff]  ;;  %v320_v8 = vld [vmem:[%s736_s1 + $0xe8] sm:$0xff]  ;;  %v25_v9 = vld [vmem:[%s736_s1 + $0x50] sm:$0xff] }
   0x4   :  { %397 = vmatpush3.msra.mxu0 %v29_v2  ;;  %430 = vmatpush3.msra.mxu1 %v322_v5  ;;  %v319_v10 = vld [vmem:[%s736_s1 + $0xe0] sm:$0xff]  ;;  %v24_v11 = vld [vmem:[%s736_s1 + $0x48] sm:$0xff]  ;;  %v318_v12 = vld [vmem:[%s736_s1 + $0xd8] sm:$0xff] }
   0x5   :  { %398 = vmatprep.subr.mxu0 %v501_v0  ;;  %431 = vmatprep.subr.mxu1 %v501_v0  ;;  %v23_v13 = vld [vmem:[%s736_s1 + $0x40] sm:$0xff]  ;;  %v317_v14 = vld [vmem:[%s736_s1 + $0xd0] sm:$0xff]  ;;  %v22_v15 = vld [vmem:[%s736_s1 + $0x38] sm:$0xff] }
   0x6   :  { %399 = vmatpush3.msra.mxu0 %v28_v3  ;;  %432 = vmatpush3.msra.mxu1 %v321_v7  ;;  %v316_v16 = vld [vmem:[%s736_s1 + $0xc8] sm:$0xff]  ;;  %v21_v17 = vld [vmem:[%s736_s1 + $0x30] sm:$0xff]  ;;  %v315_v18 = vld [vmem:[%s736_s1 + $0xc0] sm:$0xff] }
   0x7   :  { %400 = vmatprep.subr.mxu0 %v501_v0  ;;  %433 = vmatprep.subr.mxu1 %v501_v0  ;;  %v20_v19 = vld [vmem:[%s736_s1 + $0x28] sm:$0xff]  ;;  %v314_v20 = vld [vmem:[%s736_s1 + $0xb8] sm:$0xff]  ;;  %v19_v21 = vld [vmem:[%s736_s1 + $0x20] sm:$0xff] }
   0x8   :  { %401 = vmatpush3.msra.mxu0 %v27_v4  ;;  %434 = vmatpush3.msra.mxu1 %v320_v8  ;;  %v313_v22 = vld [vmem:[%s736_s1 + $0xb0] sm:$0xff]  ;;  %v18_v23 = vld [vmem:[%s736_s1 + $0x18] sm:$0xff]  ;;  %v312_v24 = vld [vmem:[%s736_s1 + $0xa8] sm:$0xff] }
   0x9   :  { %402 = vmatprep.subr.mxu0 %v501_v0  ;;  %435 = vmatprep.subr.mxu1 %v501_v0  ;;  %v17_v25 = vld [vmem:[%s736_s1 + $0x10] sm:$0xff]  ;;  %v311_v26 = vld [vmem:[%s736_s1 + $0xa0] sm:$0xff]  ;;  %v16_v27 = vld [vmem:[%s736_s1 + $0x8] sm:$0xff] }
   0xa   :  { %403 = vmatpush3.msra.mxu0 %v26_v6  ;;  %436 = vmatpush3.msra.mxu1 %v319_v10  ;;  %v310_v28 = vld [vmem:[%s736_s1 + $0x98] sm:$0xff]  ;;  %v15_v29 = vld [vmem:[%s736_s1] sm:$0xff]  ;;  %v309_v31 = vld [vmem:[%s736_s1 + $0x90] sm:$0xff] }
   0xb   :  { %404 = vmatprep.subr.mxu0 %v501_v0  ;;  %437 = vmatprep.subr.mxu1 %v501_v0  ;;  %v14_v30 = vld [vmem:[%s737_s0] sm:$0xff]  ;;  %v308_v32 = vld [vmem:[%s736_s1 + $0x88] sm:$0xff]  ;;  %v340_v34 = vld [vmem:[%s736_s1 + $0x178] sm:$0xff] }
   0xc   :  { %405 = vmatpush3.msra.mxu0 %v25_v9  ;;  %438 = vmatpush3.msra.mxu1 %v318_v12  ;;  %v307_v33 = vld [vmem:[%s736_s1 + $0x80] sm:$0xff]  ;;  %v339_v35 = vld [vmem:[%s736_s1 + $0x170] sm:$0xff]  ;;  %v338_v36 = vld [vmem:[%s736_s1 + $0x168] sm:$0xff] }
   0xd   :  { %406 = vmatprep.subr.mxu0 %v501_v0  ;;  %439 = vmatprep.subr.mxu1 %v501_v0  ;;  %v337_v37 = vld [vmem:[%s736_s1 + $0x160] sm:$0xff]  ;;  %v336_v38 = vld [vmem:[%s736_s1 + $0x158] sm:$0xff]  ;;  %v335_v39 = vld [vmem:[%s736_s1 + $0x150] sm:$0xff] }
   0xe   :  { %407 = vmatpush3.msra.mxu0 %v24_v11  ;;  %440 = vmatpush3.msra.mxu1 %v317_v14  ;;  %v334_v40 = vld [vmem:[%s736_s1 + $0x148] sm:$0xff]  ;;  %v333_v41 = vld [vmem:[%s736_s1 + $0x140] sm:$0xff]  ;;  %v332_v42 = vld [vmem:[%s736_s1 + $0x138] sm:$0xff] }
   0xf   :  { %408 = vmatprep.subr.mxu0 %v501_v0  ;;  %441 = vmatprep.subr.mxu1 %v501_v0  ;;  %v331_v43 = vld [vmem:[%s736_s1 + $0x130] sm:$0xff]  ;;  %v330_v44 = vld [vmem:[%s736_s1 + $0x128] sm:$0xff]  ;;  %v329_v45 = vld [vmem:[%s736_s1 + $0x120] sm:$0xff] }
  0x10   :  { %409 = vmatpush3.msra.mxu0 %v23_v13  ;;  %442 = vmatpush3.msra.mxu1 %v316_v16  ;;  %v328_v46 = vld [vmem:[%s736_s1 + $0x118] sm:$0xff]  ;;  %v306_v47 = vld [vmem:[%s738_s2] ss:$0 sm:$0xff]  ;;  %v327_v52 = vld [vmem:[%s736_s1 + $0x110] sm:$0xff] }
  0x11   :  { %410 = vmatprep.subr.mxu0 %v501_v0  ;;  %443 = vmatprep.subr.mxu1 %v501_v0  ;;  %v326_v53 = vld [vmem:[%s736_s1 + $0x108] sm:$0xff]  ;;  %v325_v54 = vld [vmem:[%s736_s1 + $0x100] sm:$0xff] }
  0x12   :  { %411 = vmatpush3.msra.mxu0 %v22_v15  ;;  %444 = vmatpush3.msra.mxu1 %v315_v18  ;;  %v324_v55 = vld [vmem:[%s738_s2 + $0x1] ss:$0 sm:$0xff]  ;;  %v342_v60 = vld [vmem:[%s738_s2 + $0x2] ss:$0 sm:$0xff] }
  0x13   :  { %412 = vmatprep.subr.mxu0 %v501_v0  ;;  %445 = vmatprep.subr.mxu1 %v501_v0 }
  0x14   :  { %413 = vmatpush3.msra.mxu0 %v21_v17  ;;  %446 = vmatpush3.msra.mxu1 %v314_v20 }
  0x15   :  { %414 = vmatprep.subr.mxu0 %v501_v0  ;;  %447 = vmatprep.subr.mxu1 %v501_v0 }
  0x16   :  { %415 = vmatpush3.msra.mxu0 %v20_v19  ;;  %448 = vmatpush3.msra.mxu1 %v313_v22 }
  0x17   :  { %416 = vmatprep.subr.mxu0 %v501_v0  ;;  %449 = vmatprep.subr.mxu1 %v501_v0 }
  0x18   :  { %417 = vmatpush3.msra.mxu0 %v19_v21  ;;  %450 = vmatpush3.msra.mxu1 %v312_v24 }
  0x19   :  { %418 = vmatprep.subr.mxu0 %v501_v0  ;;  %451 = vmatprep.subr.mxu1 %v501_v0 }
  0x1a   :  { %419 = vmatpush3.msra.mxu0 %v18_v23  ;;  %452 = vmatpush3.msra.mxu1 %v311_v26 }
  0x1b   :  { %420 = vmatprep.subr.mxu0 %v501_v0  ;;  %453 = vmatprep.subr.mxu1 %v501_v0 }
  0x1c   :  { %421 = vmatpush3.msra.mxu0 %v17_v25  ;;  %454 = vmatpush3.msra.mxu1 %v310_v28 }
  0x1d   :  { %422 = vmatprep.subr.mxu0 %v501_v0  ;;  %455 = vmatprep.subr.mxu1 %v501_v0 }
  0x1e   :  { %423 = vmatpush3.msra.mxu0 %v16_v27  ;;  %456 = vmatpush3.msra.mxu1 %v309_v31 }
  0x1f   :  { %424 = vmatprep.subr.mxu0 %v501_v0  ;;  %457 = vmatprep.subr.mxu1 %v501_v0 }
  0x20   :  { %425 = vmatpush3.msra.mxu0 %v15_v29  ;;  %458 = vmatpush3.msra.mxu1 %v308_v32 }
  0x21   :  { %427 = vmatmul.mubr.f32.vlgmr.msra.gmra.mxu0 %v14_v30  ;;  %464 = vmatprep.subr.mxu0 %v501_v0 }
  0x22   :  { %496 = vmatprep.mubr.msk.f32.mxu0 %vm502_vm0, %v501_v0  ;;  %459 = vmatprep.subr.mxu1 %v501_v0 }
  0x23   :  { %460 = vmatpush3.msra.mxu1 %v307_v33  ;;  %465 = vmatpush3.msra.mxu0 %v340_v34 }
  0x24   :  { %466 = vmatprep.subr.mxu0 %v501_v0 }
  0x25   :  { %467 = vmatpush3.msra.mxu0 %v339_v35 }
  0x26   :  { %468 = vmatprep.subr.mxu0 %v501_v0 }
  0x27   :  { %469 = vmatpush3.msra.mxu0 %v338_v36 }
  0x28   :  { %470 = vmatprep.subr.mxu0 %v501_v0 }
  0x29   :  { %471 = vmatpush3.msra.mxu0 %v337_v37 }
  0x2a   :  { %472 = vmatprep.subr.mxu0 %v501_v0 }
  0x2b   :  { %473 = vmatpush3.msra.mxu0 %v336_v38 }
  0x2c   :  { %474 = vmatprep.subr.mxu0 %v501_v0 }
  0x2d   :  { %475 = vmatpush3.msra.mxu0 %v335_v39 }
  0x2e   :  { %476 = vmatprep.subr.mxu0 %v501_v0 }
  0x2f   :  { %477 = vmatpush3.msra.mxu0 %v334_v40 }
  0x30   :  { %478 = vmatprep.subr.mxu0 %v501_v0 }
  0x31   :  { %479 = vmatpush3.msra.mxu0 %v333_v41 }
  0x32   :  { %480 = vmatprep.subr.mxu0 %v501_v0 }
  0x33   :  { %481 = vmatpush3.msra.mxu0 %v332_v42 }
  0x34   :  { %482 = vmatprep.subr.mxu0 %v501_v0 }
  0x35   :  { %483 = vmatpush3.msra.mxu0 %v331_v43 }
  0x36   :  { %484 = vmatprep.subr.mxu0 %v501_v0 }
  0x37   :  { %485 = vmatpush3.msra.mxu0 %v330_v44 }
  0x38   :  { %486 = vmatprep.subr.mxu0 %v501_v0 }
  0x39   :  { %487 = vmatpush3.msra.mxu0 %v329_v45 }
  0x3a   :  { %488 = vmatprep.subr.mxu0 %v501_v0 }
  0x3b   :  { %489 = vmatpush3.msra.mxu0 %v328_v46 }
  0x3c   :  { %490 = vmatprep.subr.mxu0 %v501_v0 }
  0x3d   :  { %491 = vmatpush3.msra.mxu0 %v327_v52 }
  0x3e   :  { %492 = vmatprep.subr.mxu0 %v501_v0 }
  0x3f   :  { %493 = vmatpush3.msra.mxu0 %v326_v53 }
  0x40   :  { %494 = vmatprep.subr.mxu0 %v501_v0 }
  0x41   :  { %495 = vmatpush3.msra.mxu0 %v325_v54 }
  0xe1   :  { %v104_v48 = vpop.f32.mrf.mxu0 }
  0xe2   :  { %v105_v49 = vadd.f32 %v306_v47, %v104_v48 }
  0xe3   :  { %v428_v50 = vpop.f32.mrf.mxu0 }
  0xe4   :  { %v108_v51 = vmax.f32 %v105_v49, 0.0 }
  0xe6   :  { %462 = vmatmul.mubr.f32.vlgmr.msra.gmra.mxu1 %v108_v51 }
 0x1a6   :  { %v200_v56 = vpop.f32.mrf.mxu1 }
 0x1a7   :  { %v201_v57 = vadd.f32 %v324_v55, %v200_v56 }
 0x1a8   :  { %v463_v58 = vpop.f32.mrf.mxu1 }
 0x1a9   :  { %v204_v59 = vmax.f32 %v201_v57, 0.0 }
 0x1ab   :  { %497 = vmatmul.mubr.f32.vlgmr.msra.gmra.mxu0 %v204_v59 }
 0x26b   :  { %v296_v61 = vpop.f32.mrf.mxu0 }
 0x26c   :  { %v297_v62 = vadd.f32 %v342_v60, %v296_v61 }
 0x26d   :  { %v498_v63 = vpop.f32.mrf.mxu0 }
 0x26e   :  { %301 = vst.msk [vmem:[%s739_s3] sm:$0xff] %vm300_vm1, %v297_v62 }

</bundles_post_ra>
